<compile_context>
chip_gen: v6e
topology: v6e:2x2x1
jax: 0.10.0
libtpu: 0.0.40
codegen_flags: <defaults>
</compile_context>

<pallas_src>
import numpy as np
import jax
import jax.numpy as jnp
from jax.experimental import pallas as pl
from jax.experimental.pallas import tpu as pltpu


def _round_up(x, m):
    return ((x + m - 1) // m) * m


# ----------------------------------------------------------------------------
# Host-side tree preprocessing.
# ----------------------------------------------------------------------------
def compute_levels(children):
    """Depth levels (leaves = level 0) + root node index."""
    S = len(children)
    for cs in children:
        for c in cs:
            assert 0 <= c < S, f"child index {c} out of range"
    all_children = {c for cs in children for c in cs}
    roots = [n for n in range(S) if n not in all_children]
    assert len(roots) == 1, "expected exactly one root node"
    root = roots[0]

    depth = [None] * S

    def d(n):
        if depth[n] is None:
            depth[n] = 0 if not children[n] else 1 + max(d(c) for c in children[n])
        return depth[n]

    for n in range(S):
        d(n)
    max_d = max(depth)
    levels = [[n for n in range(S) if depth[n] == lvl] for lvl in range(max_d + 1)]
    return levels, root


def build_schedule(children, B):
    """Level-ordered, sublane-padded row layout + child-sum gather matrices."""
    levels, root = compute_levels(children)
    n_lvls = len(levels)

    lvl_rows = [_round_up(len(l) * B, 8) for l in levels]   # padded rows / level
    lvl_start = [int(v) for v in np.cumsum([0] + lvl_rows)]
    n_rows = lvl_start[-1]

    # Row base of each node in the padded, level-ordered layout.
    row_base = [None] * len(children)
    for lvl, nodes in enumerate(levels):
        for p, n in enumerate(nodes):
            row_base[n] = lvl_start[lvl] + p * B

    # Gather indices to build the level-ordered embedding rows on the host.
    node_of_row = np.zeros((n_rows,), np.int32)
    batch_of_row = np.zeros((n_rows,), np.int32)
    valid_row = np.zeros((n_rows,), np.float32)
    for lvl, nodes in enumerate(levels):
        for p, n in enumerate(nodes):
            for b in range(B):
                r = lvl_start[lvl] + p * B + b
                node_of_row[r] = n
                batch_of_row[r] = b
                valid_row[r] = 1.0

    # Concatenated 0/1 child-sum gather matrices (one block per internal level):
    # chs[row] = sum over children c of h_all[row_base[c] + batch].
    a_rows = sum(lvl_rows[1:]) if n_lvls > 1 else 0
    a_rows_alloc = max(a_rows, 8)                      # dummy block if no internals
    A = np.zeros((a_rows_alloc, n_rows), np.float32)
    a_offsets = []
    off = 0
    for lvl in range(1, n_lvls):
        a_offsets.append(off)
        for p, n in enumerate(levels[lvl]):
            for c in children[n]:
                for b in range(B):
                    A[off + p * B + b, row_base[c] + b] += 1.0
        off += lvl_rows[lvl]

    return dict(levels=levels, root=root, lvl_rows=lvl_rows, lvl_start=lvl_start,
                n_rows=n_rows, row_base=row_base, a_offsets=a_offsets,
                node_of_row=node_of_row, batch_of_row=batch_of_row,
                valid_row=valid_row, A=A)


# ----------------------------------------------------------------------------
# Recurrence kernel (tree structure is closed over -> fully static kernel).
# ----------------------------------------------------------------------------
def make_recurrence_kernel(sched, B, mem):
    lvl_start = sched["lvl_start"]
    lvl_rows = sched["lvl_rows"]
    a_offsets = sched["a_offsets"]
    n_lvls = len(sched["levels"])
    root_row = sched["row_base"][sched["root"]]

    def kernel(xr_ref, xz_ref, xh_ref, a_ref, wrh_ref, wzh_ref, whu_ref,
               h_out_ref, h_all):
        # Zero-init so zero columns of the gather matrix never multiply
        # uninitialized VMEM (0 * NaN hazard).
        h_all[...] = jnp.zeros_like(h_all)

        # --- leaf level: child_h_sum == 0 -> no recurrent dots, r irrelevant.
        L0 = lvl_rows[0]
        h_all[0:L0, :] = jax.nn.sigmoid(xz_ref[0:L0, :]) * jnp.tanh(xh_ref[0:L0, :])

        wrh = wrh_ref[...]
        wzh = wzh_ref[...]
        whu = whu_ref[...]

        # --- internal levels: one batched GRU step per level; only static,
        #     sublane-aligned row slices; child sums via one MXU gather dot.
        for lvl in range(1, n_lvls):                      # static Python loop
            s = lvl_start[lvl]
            L = lvl_rows[lvl]
            a0 = a_offsets[lvl - 1]
            chs = jnp.dot(a_ref[a0:a0 + L, :], h_all[...],
                          preferred_element_type=jnp.float32)       # (L, mem)
            r = jax.nn.sigmoid(
                xr_ref[s:s + L, :]
                + jnp.dot(chs, wrh, preferred_element_type=jnp.float32))
            z = jax.nn.sigmoid(
                xz_ref[s:s + L, :]
                + jnp.dot(chs, wzh, preferred_element_type=jnp.float32))
            hp = jnp.tanh(
                xh_ref[s:s + L, :]
                + jnp.dot(r * chs, whu, preferred_element_type=jnp.float32))
            h_all[s:s + L, :] = (1.0 - z) * chs + z * hp

        # --- root hidden state out.
        h_out_ref[...] = h_all[root_row:root_row + B, :]

    return kernel


# ----------------------------------------------------------------------------
# Wrapper: host-side gather / projection (XLA) + Pallas recurrence.
# ----------------------------------------------------------------------------
def child_sum_tree_gru(emb, params, children):
    """emb: (B, S, in_dim) f32. Returns root hidden state (B, mem)."""
    B, S, in_dim = emb.shape
    mem = params["whu"].shape[0]

    sched = build_schedule(children, B)
    n_rows = sched["n_rows"]

    # Level-ordered, padded per-node input rows (glue gather, plain JAX).
    x_rows = emb[jnp.asarray(sched["batch_of_row"]),
                 jnp.asarray(sched["node_of_row"]), :]
    x_rows = x_rows * jnp.asarray(sched["valid_row"])[:, None]     # zero pad rows

    # Fold x-side projections and paired biases (brzh / bhu are added even when
    # child_h_sum == 0, matching nn.Linear on a zero input), then run the dense
    # GEMM with XLA: bf16 inputs, f32 accumulation.
    wrzx, wrzh = params["wrzx"], params["wrzh"]
    w_all = jnp.concatenate([wrzx[:, :mem], wrzx[:, mem:], params["whx"]], axis=1)
    b_all = jnp.concatenate(
        [params["brzx"][:, :mem] + params["brzh"][:, :mem],
         params["brzx"][:, mem:] + params["brzh"][:, mem:],
         params["bhx"] + params["bhu"]], axis=1)
    x_proj = jnp.dot(x_rows.astype(jnp.bfloat16), w_all.astype(jnp.bfloat16),
                     preferred_element_type=jnp.float32) + b_all   # (n_rows, 3*mem)
    x_r = x_proj[:, :mem]
    x_z = x_proj[:, mem:2 * mem]
    x_h = x_proj[:, 2 * mem:]

    wrh = wrzh[:, :mem]
    wzh = wrzh[:, mem:]

    kernel = make_recurrence_kernel(sched, B, mem)
    vmem = pl.BlockSpec(memory_space=pltpu.MemorySpace.VMEM)
    f = pl.pallas_call(
        kernel,
        out_shape=jax.ShapeDtypeStruct((B, mem), jnp.float32),
        in_specs=[vmem] * 7,
        out_specs=vmem,
        scratch_shapes=[pltpu.VMEM((n_rows, mem), jnp.float32)],
    )
    return f(x_r, x_z, x_h, jnp.asarray(sched["A"]),
             wrh, wzh, params["whu"])


def test_tree_lstm_forward(token_ids, emb_table, params, children):
    emb = emb_table[token_ids]                     # (B, S, in_dim) — glue lookup
    B, S = token_ids.shape
    mem = params["whu"].shape[0]
    h = child_sum_tree_gru(emb, params, children)
    # ChildSumTreeGRU allocates o_states with zeros and never writes it.
    o = jnp.zeros((B, S, mem), jnp.float32)
    return o, h


# ----------------------------------------------------------------------------
# Pure-numpy reference of ChildSumTreeGRU over the same tree.
# ----------------------------------------------------------------------------
def ref_gru(emb_nodes, params, children, root):
    e = np.asarray(emb_nodes)
    p = {k: np.asarray(v) for k, v in params.items()}
    S, B, _ = e.shape
    mem = p["whu"].shape[0]
    sig = lambda v: 1.0 / (1.0 + np.exp(-v))
    states = [None] * S
    order = []
    seen = set()

    def visit(n):
        if n in seen:
            return
        for c in children[n]:
            visit(c)
        seen.add(n)
        order.append(n)

    visit(root)
    for n in order:
        chs = (sum(states[c] for c in children[n]) if children[n]
               else np.zeros((B, mem), np.float32))
        x = e[n]
        rz = x @ p["wrzx"] + p["brzx"] + chs @ p["wrzh"] + p["brzh"]
        r, z = sig(rz[:, :mem]), sig(rz[:, mem:])
        hp = np.tanh(x @ p["whx"] + p["bhx"] + (r * chs) @ p["whu"] + p["bhu"])
        states[n] = (1.0 - z) * chs + z * hp
    return states[root]


if __name__ == "__main__":
    vocab_size, in_dim, mem_dim = 32, 16, 32
    B, S = 2, 8

    key = jax.random.PRNGKey(0)
    keys = jax.random.split(key, 10)
    emb_table = 0.1 * jax.random.normal(keys[0], (vocab_size, in_dim), jnp.float32)
    params = {
        "wrzx": 0.1 * jax.random.normal(keys[1], (in_dim, 2 * mem_dim), jnp.float32),
        "brzx": 0.1 * jax.random.normal(keys[2], (1, 2 * mem_dim), jnp.float32),
        "wrzh": 0.1 * jax.random.normal(keys[3], (mem_dim, 2 * mem_dim), jnp.float32),
        "brzh": 0.1 * jax.random.normal(keys[4], (1, 2 * mem_dim), jnp.float32),
        "whx": 0.1 * jax.random.normal(keys[5], (in_dim, mem_dim), jnp.float32),
        "bhx": 0.1 * jax.random.normal(keys[6], (1, mem_dim), jnp.float32),
        "whu": 0.1 * jax.random.normal(keys[7], (mem_dim, mem_dim), jnp.float32),
        "bhu": 0.1 * jax.random.normal(keys[8], (1, mem_dim), jnp.float32),
    }
    token_ids = jax.random.randint(keys[9], (B, S), 0, vocab_size)

    # Deterministic tree shared across the batch (post-order numbering):
    # leaves 0,1,2,4,5; node 3 <- {0,1,2}; node 6 <- {4,5}; root 7 <- {3,6}.
    children = [[], [], [], [0, 1, 2], [], [], [4, 5], [3, 6]]

    o, h = test_tree_lstm_forward(token_ids, emb_table, params, children)
    o = jax.block_until_ready(o)
    h = jax.block_until_ready(h)

    # Correctness check against an f32 numpy reference.  The hoisted input
    # projection runs with bf16 inputs (f32 accumulation), so tolerance is at
    # bf16 level rather than 1e-5.
    _, root = compute_levels(children)
    emb_nodes_ref = jnp.transpose(emb_table[token_ids], (1, 0, 2))
    h_ref = ref_gru(emb_nodes_ref, params, children, root)
    assert o.shape == (B, S, mem_dim) and h.shape == (B, mem_dim)
    np.testing.assert_allclose(np.asarray(h), h_ref, rtol=1e-2, atol=1e-2)
    assert np.all(np.asarray(o) == 0.0)

    print("KERNEL_OK")
</pallas_src>

<mosaic_0001>
module attributes {stable_mosaic.version = 11 : i64} {
  func.func @kernel(%arg0: memref<32x32xf32, #tpu.memory_space<vmem>>, %arg1: memref<32x32xf32, #tpu.memory_space<vmem>>, %arg2: memref<32x32xf32, #tpu.memory_space<vmem>>, %arg3: memref<16x32xf32, #tpu.memory_space<vmem>>, %arg4: memref<32x32xf32, #tpu.memory_space<vmem>>, %arg5: memref<32x32xf32, #tpu.memory_space<vmem>>, %arg6: memref<32x32xf32, #tpu.memory_space<vmem>>, %arg7: memref<2x32xf32, #tpu.memory_space<vmem>>, %arg8: memref<32x32xf32, #tpu.memory_space<vmem>>) attributes {dimension_semantics = [], scalar_prefetch = 0 : i64, scratch_operands = 1 : i64, tpu.core_type = #tpu.core_type<tc>} {
    %cst = arith.constant 0.000000e+00 : f32
    %0 = vector.broadcast %cst : f32 to vector<32x32xf32>
    %c0 = arith.constant 0 : index
    %c0_0 = arith.constant 0 : index
    %1 = vector.load %arg8[%c0, %c0_0] : memref<32x32xf32, #tpu.memory_space<vmem>>, vector<32x32xf32>
    tpu.vector_store %arg8[%c0, %c0_0], %0 {strides = array<i32>} : memref<32x32xf32, #tpu.memory_space<vmem>>, vector<32x32xf32>,
    %c0_1 = arith.constant 0 : index
    %c0_2 = arith.constant 0 : index
    %2 = vector.load %arg1[%c0_1, %c0_2] : memref<32x32xf32, #tpu.memory_space<vmem>>, vector<16x32xf32>
    %3 = arith.negf %2 : vector<16x32xf32>
    %4 = math.exp %3 : vector<16x32xf32>
    %cst_3 = arith.constant 1.000000e+00 : f32
    %5 = vector.broadcast %cst_3 : f32 to vector<16x32xf32>
    %6 = arith.addf %5, %4 : vector<16x32xf32>
    %7 = arith.divf %5, %6 : vector<16x32xf32>
    %c0_4 = arith.constant 0 : index
    %c0_5 = arith.constant 0 : index
    %8 = vector.load %arg2[%c0_4, %c0_5] : memref<32x32xf32, #tpu.memory_space<vmem>>, vector<16x32xf32>
    %9 = math.tanh %8 : vector<16x32xf32>
    %10 = arith.mulf %7, %9 : vector<16x32xf32>
    %c0_6 = arith.constant 0 : index
    %c0_7 = arith.constant 0 : index
    %11 = vector.load %arg8[%c0_6, %c0_7] : memref<32x32xf32, #tpu.memory_space<vmem>>, vector<16x32xf32>
    tpu.vector_store %arg8[%c0_6, %c0_7], %10 {strides = array<i32>} : memref<32x32xf32, #tpu.memory_space<vmem>>, vector<16x32xf32>,
    %c0_8 = arith.constant 0 : index
    %c0_9 = arith.constant 0 : index
    %12 = vector.load %arg4[%c0_8, %c0_9] : memref<32x32xf32, #tpu.memory_space<vmem>>, vector<32x32xf32>
    %c0_10 = arith.constant 0 : index
    %c0_11 = arith.constant 0 : index
    %13 = vector.load %arg5[%c0_10, %c0_11] : memref<32x32xf32, #tpu.memory_space<vmem>>, vector<32x32xf32>
    %c0_12 = arith.constant 0 : index
    %c0_13 = arith.constant 0 : index
    %14 = vector.load %arg6[%c0_12, %c0_13] : memref<32x32xf32, #tpu.memory_space<vmem>>, vector<32x32xf32>
    %c0_14 = arith.constant 0 : index
    %c0_15 = arith.constant 0 : index
    %15 = vector.load %arg3[%c0_14, %c0_15] : memref<16x32xf32, #tpu.memory_space<vmem>>, vector<8x32xf32>
    %c0_16 = arith.constant 0 : index
    %c0_17 = arith.constant 0 : index
    %16 = vector.load %arg8[%c0_16, %c0_17] : memref<32x32xf32, #tpu.memory_space<vmem>>, vector<32x32xf32>
    %cst_18 = arith.constant dense<0.000000e+00> : vector<8x32xf32>
    %17 = tpu.matmul %15, %16, %cst_18 {dimension_numbers = #tpu.dot_dimension_numbers<[1], [0], [0], [1], [0, 0, 1, 1], [], []>} : vector<8x32xf32>, vector<32x32xf32>, vector<8x32xf32> -> vector<8x32xf32>
    %c16 = arith.constant 16 : index
    %c0_19 = arith.constant 0 : index
    %18 = vector.load %arg0[%c16, %c0_19] : memref<32x32xf32, #tpu.memory_space<vmem>>, vector<8x32xf32>
    %cst_20 = arith.constant dense<0.000000e+00> : vector<8x32xf32>
    %19 = tpu.matmul %17, %12, %cst_20 {dimension_numbers = #tpu.dot_dimension_numbers<[1], [0], [0], [1], [0, 0, 1, 1], [], []>} : vector<8x32xf32>, vector<32x32xf32>, vector<8x32xf32> -> vector<8x32xf32>
    %20 = arith.addf %18, %19 : vector<8x32xf32>
    %21 = arith.negf %20 : vector<8x32xf32>
    %22 = math.exp %21 : vector<8x32xf32>
    %cst_21 = arith.constant 1.000000e+00 : f32
    %23 = vector.broadcast %cst_21 : f32 to vector<8x32xf32>
    %24 = arith.addf %23, %22 : vector<8x32xf32>
    %25 = arith.divf %23, %24 : vector<8x32xf32>
    %c16_22 = arith.constant 16 : index
    %c0_23 = arith.constant 0 : index
    %26 = vector.load %arg1[%c16_22, %c0_23] : memref<32x32xf32, #tpu.memory_space<vmem>>, vector<8x32xf32>
    %cst_24 = arith.constant dense<0.000000e+00> : vector<8x32xf32>
    %27 = tpu.matmul %17, %13, %cst_24 {dimension_numbers = #tpu.dot_dimension_numbers<[1], [0], [0], [1], [0, 0, 1, 1], [], []>} : vector<8x32xf32>, vector<32x32xf32>, vector<8x32xf32> -> vector<8x32xf32>
    %28 = arith.addf %26, %27 : vector<8x32xf32>
    %29 = arith.negf %28 : vector<8x32xf32>
    %30 = math.exp %29 : vector<8x32xf32>
    %cst_25 = arith.constant 1.000000e+00 : f32
    %31 = vector.broadcast %cst_25 : f32 to vector<8x32xf32>
    %32 = arith.addf %31, %30 : vector<8x32xf32>
    %33 = arith.divf %31, %32 : vector<8x32xf32>
    %c16_26 = arith.constant 16 : index
    %c0_27 = arith.constant 0 : index
    %34 = vector.load %arg2[%c16_26, %c0_27] : memref<32x32xf32, #tpu.memory_space<vmem>>, vector<8x32xf32>
    %35 = arith.mulf %25, %17 : vector<8x32xf32>
    %cst_28 = arith.constant dense<0.000000e+00> : vector<8x32xf32>
    %36 = tpu.matmul %35, %14, %cst_28 {dimension_numbers = #tpu.dot_dimension_numbers<[1], [0], [0], [1], [0, 0, 1, 1], [], []>} : vector<8x32xf32>, vector<32x32xf32>, vector<8x32xf32> -> vector<8x32xf32>
    %37 = arith.addf %34, %36 : vector<8x32xf32>
    %38 = math.tanh %37 : vector<8x32xf32>
    %cst_29 = arith.constant 1.000000e+00 : f32
    %39 = vector.broadcast %cst_29 : f32 to vector<8x32xf32>
    %40 = arith.subf %39, %33 : vector<8x32xf32>
    %41 = arith.mulf %40, %17 : vector<8x32xf32>
    %42 = arith.mulf %33, %38 : vector<8x32xf32>
    %43 = arith.addf %41, %42 : vector<8x32xf32>
    %c16_30 = arith.constant 16 : index
    %c0_31 = arith.constant 0 : index
    %44 = vector.load %arg8[%c16_30, %c0_31] : memref<32x32xf32, #tpu.memory_space<vmem>>, vector<8x32xf32>
    tpu.vector_store %arg8[%c16_30, %c0_31], %43 {strides = array<i32>} : memref<32x32xf32, #tpu.memory_space<vmem>>, vector<8x32xf32>,
    %c8 = arith.constant 8 : index
    %c0_32 = arith.constant 0 : index
    %45 = vector.load %arg3[%c8, %c0_32] : memref<16x32xf32, #tpu.memory_space<vmem>>, vector<8x32xf32>
    %c0_33 = arith.constant 0 : index
    %c0_34 = arith.constant 0 : index
    %46 = vector.load %arg8[%c0_33, %c0_34] : memref<32x32xf32, #tpu.memory_space<vmem>>, vector<32x32xf32>
    %cst_35 = arith.constant dense<0.000000e+00> : vector<8x32xf32>
    %47 = tpu.matmul %45, %46, %cst_35 {dimension_numbers = #tpu.dot_dimension_numbers<[1], [0], [0], [1], [0, 0, 1, 1], [], []>} : vector<8x32xf32>, vector<32x32xf32>, vector<8x32xf32> -> vector<8x32xf32>
    %c24 = arith.constant 24 : index
    %c0_36 = arith.constant 0 : index
    %48 = vector.load %arg0[%c24, %c0_36] : memref<32x32xf32, #tpu.memory_space<vmem>>, vector<8x32xf32>
    %cst_37 = arith.constant dense<0.000000e+00> : vector<8x32xf32>
    %49 = tpu.matmul %47, %12, %cst_37 {dimension_numbers = #tpu.dot_dimension_numbers<[1], [0], [0], [1], [0, 0, 1, 1], [], []>} : vector<8x32xf32>, vector<32x32xf32>, vector<8x32xf32> -> vector<8x32xf32>
    %50 = arith.addf %48, %49 : vector<8x32xf32>
    %51 = arith.negf %50 : vector<8x32xf32>
    %52 = math.exp %51 : vector<8x32xf32>
    %cst_38 = arith.constant 1.000000e+00 : f32
    %53 = vector.broadcast %cst_38 : f32 to vector<8x32xf32>
    %54 = arith.addf %53, %52 : vector<8x32xf32>
    %55 = arith.divf %53, %54 : vector<8x32xf32>
    %c24_39 = arith.constant 24 : index
    %c0_40 = arith.constant 0 : index
    %56 = vector.load %arg1[%c24_39, %c0_40] : memref<32x32xf32, #tpu.memory_space<vmem>>, vector<8x32xf32>
    %cst_41 = arith.constant dense<0.000000e+00> : vector<8x32xf32>
    %57 = tpu.matmul %47, %13, %cst_41 {dimension_numbers = #tpu.dot_dimension_numbers<[1], [0], [0], [1], [0, 0, 1, 1], [], []>} : vector<8x32xf32>, vector<32x32xf32>, vector<8x32xf32> -> vector<8x32xf32>
    %58 = arith.addf %56, %57 : vector<8x32xf32>
    %59 = arith.negf %58 : vector<8x32xf32>
    %60 = math.exp %59 : vector<8x32xf32>
    %cst_42 = arith.constant 1.000000e+00 : f32
    %61 = vector.broadcast %cst_42 : f32 to vector<8x32xf32>
    %62 = arith.addf %61, %60 : vector<8x32xf32>
    %63 = arith.divf %61, %62 : vector<8x32xf32>
    %c24_43 = arith.constant 24 : index
    %c0_44 = arith.constant 0 : index
    %64 = vector.load %arg2[%c24_43, %c0_44] : memref<32x32xf32, #tpu.memory_space<vmem>>, vector<8x32xf32>
    %65 = arith.mulf %55, %47 : vector<8x32xf32>
    %cst_45 = arith.constant dense<0.000000e+00> : vector<8x32xf32>
    %66 = tpu.matmul %65, %14, %cst_45 {dimension_numbers = #tpu.dot_dimension_numbers<[1], [0], [0], [1], [0, 0, 1, 1], [], []>} : vector<8x32xf32>, vector<32x32xf32>, vector<8x32xf32> -> vector<8x32xf32>
    %67 = arith.addf %64, %66 : vector<8x32xf32>
    %68 = math.tanh %67 : vector<8x32xf32>
    %cst_46 = arith.constant 1.000000e+00 : f32
    %69 = vector.broadcast %cst_46 : f32 to vector<8x32xf32>
    %70 = arith.subf %69, %63 : vector<8x32xf32>
    %71 = arith.mulf %70, %47 : vector<8x32xf32>
    %72 = arith.mulf %63, %68 : vector<8x32xf32>
    %73 = arith.addf %71, %72 : vector<8x32xf32>
    %c24_47 = arith.constant 24 : index
    %c0_48 = arith.constant 0 : index
    %74 = vector.load %arg8[%c24_47, %c0_48] : memref<32x32xf32, #tpu.memory_space<vmem>>, vector<8x32xf32>
    tpu.vector_store %arg8[%c24_47, %c0_48], %73 {strides = array<i32>} : memref<32x32xf32, #tpu.memory_space<vmem>>, vector<8x32xf32>,
    %c24_49 = arith.constant 24 : index
    %c0_50 = arith.constant 0 : index
    %75 = vector.load %arg8[%c24_49, %c0_50] : memref<32x32xf32, #tpu.memory_space<vmem>>, vector<2x32xf32>
    %c0_51 = arith.constant 0 : index
    %c0_52 = arith.constant 0 : index
    %76 = vector.load %arg7[%c0_51, %c0_52] : memref<2x32xf32, #tpu.memory_space<vmem>>, vector<2x32xf32>
    tpu.vector_store %arg7[%c0_51, %c0_52], %75 {strides = array<i32>} : memref<2x32xf32, #tpu.memory_space<vmem>>, vector<2x32xf32>,
    return
  }
}

</mosaic_0001>

<bundles_post_ra>
// kernel: tpu_custom_call.1
= control target key start
LH: loop header
LB: loop body
LE: loop exit
PB: predicated region body
PF: predicated region fallthrough
CT: control target
= control target key end

     0   :  { %12 = vsyncpa [#allocation4], 0  ;;  %s1397_s0 = inlined_call_operand.hbm [shape: f32[32,32], index: 0, kind: input, shape index: {}]   ;;  %s1398_s1 = inlined_call_operand.hbm [shape: f32[32,32], index: 1, kind: input, shape index: {}]   ;;  %s1399_s2 = inlined_call_operand.hbm [shape: f32[32,32], index: 2, kind: input, shape index: {}]   ;;  %s1400_s3 = inlined_call_operand.hbm [shape: f32[16,32], index: 3, kind: input, shape index: {}]   ;;  %s1401_s4 = inlined_call_operand.hbm [shape: f32[32,32], index: 4, kind: input, shape index: {}]   ;;  %s1402_s5 = inlined_call_operand.hbm [shape: f32[32,32], index: 5, kind: input, shape index: {}]   ;;  %s1403_s6 = inlined_call_operand.hbm [shape: f32[32,32], index: 6, kind: input, shape index: {}]   ;;  %s1404_s7 = inlined_call_operand.hbm [shape: f32[2,32], index: 7, kind: output, shape index: {}]  }
   0x1   :  { %13 = vsyncpa [#allocation7], 0 }
   0x2   :  { %14 = vsyncpa [#allocation10], 0 }
   0x3   :  { %15 = vsyncpa [#allocation13], 0 }
   0x4   :  { %16 = vsyncpa [#allocation5], 0  ;;  %s1176_s24 = smov [#allocation6]   ;;  %s1177_s26 = smov [#allocation9]  }
   0x5   :  { %s34_s25 = sshll.u32 %s1176_s24, 4  ;;  %s58_s27 = sshll.u32 %s1177_s26, 4  ;;  %s35_s25 = int_to_ptr.vmem [resolvable:$true] %s34_s25  ;;  %s59_s27 = int_to_ptr.vmem [resolvable:$true] %s58_s27 }
   0x6   :  { %s1014_s28 = scalar_lea.vmem %s35_s25, 512  ;;  %p1019_p1 = scmp.lt.s32.totalorder %s35_s25, %s35_s25 }
   0x7   :  { %p1015_p0 = scmp.ne.s32.totalorder %s35_s25, %s1014_s28  ;;  %p1020_p2 = scmp.lt.s32.totalorder %s1014_s28, %s1014_s28 }
   0x9   :  { %p1021_p3 = por %p1020_p2, %p1019_p1 }
   0xb   :  { %p1022_p4 = pnand %p1021_p3, %p1015_p0 }
   0xd   :  { %1025 = shalt.err (!%p1022_p4)
}
   0xe   :  { %s1178_s29 = smov 128   ;;  %s1179_s30 = smov 8  }
   0xf   :  { %40 = dma.hbm_to_vmem [thread:$0]  %s1398_s1, 512, %s35_s25, [#allocation7], %s1178_s29, %s1178_s29, %s1179_s30  }
  0x10   :  { %s1034_s10 = scalar_lea.vmem %s59_s27, 256  ;;  %p1039_p6 = scmp.lt.s32.totalorder %s59_s27, %s59_s27 }
  0x11   :  { %p1035_p5 = scmp.ne.s32.totalorder %s59_s27, %s1034_s10  ;;  %p1040_p7 = scmp.lt.s32.totalorder %s1034_s10, %s1034_s10 }
  0x13   :  { %p1041_p8 = por %p1040_p7, %p1039_p6 }
  0x15   :  { %p1042_p9 = pnand %p1041_p8, %p1035_p5 }
  0x17   :  { %1045 = shalt.err (!%p1042_p9)
}
  0x18   :  { %64 = dma.hbm_to_vmem [thread:$0]  %s1400_s3, 256, %s59_s27, [#allocation10], %s1178_s29, %s1178_s29, %s1179_s30  }
  0x19   :  { %s1180_s13 = smov [#allocation12]   ;;  %s1181_s15 = smov [#allocation3]  }
  0x1a   :  { %s82_s14 = sshll.u32 %s1180_s13, 4  ;;  %s22_s16 = sshll.u32 %s1181_s15, 4  ;;  %s83_s14 = int_to_ptr.vmem [resolvable:$true] %s82_s14  ;;  %s23_s16 = int_to_ptr.vmem [resolvable:$true] %s22_s16 }
  0x1b   :  { %s1054_s1 = scalar_lea.vmem %s83_s14, 512  ;;  %p1059_p11 = scmp.lt.s32.totalorder %s83_s14, %s83_s14 }
  0x1c   :  { %p1055_p10 = scmp.ne.s32.totalorder %s83_s14, %s1054_s1  ;;  %p1060_p12 = scmp.lt.s32.totalorder %s1054_s1, %s1054_s1 }
  0x1e   :  { %p1061_p13 = por %p1060_p12, %p1059_p11 }
  0x20   :  { %p1062_p0 = pnand %p1061_p13, %p1055_p10 }
  0x22   :  { %1065 = shalt.err (!%p1062_p0)
}
  0x23   :  { %88 = dma.hbm_to_vmem [thread:$0]  %s1402_s5, 512, %s83_s14, [#allocation13], %s1178_s29, %s1178_s29, %s1179_s30  }
  0x24   :  { %s1074_s3 = scalar_lea.vmem %s23_s16, 512  ;;  %p1079_p2 = scmp.lt.s32.totalorder %s23_s16, %s23_s16 }
  0x25   :  { %p1075_p1 = scmp.ne.s32.totalorder %s23_s16, %s1074_s3  ;;  %p1080_p3 = scmp.lt.s32.totalorder %s1074_s3, %s1074_s3 }
  0x27   :  { %p1081_p4 = por %p1080_p3, %p1079_p2 }
  0x29   :  { %p1082_p5 = pnand %p1081_p4, %p1075_p1 }
  0x2b   :  { %1085 = shalt.err (!%p1082_p5)
}
  0x2c   :  { %28 = dma.hbm_to_vmem [thread:$0]  %s1397_s0, 512, %s23_s16, [#allocation4], %s1178_s29, %s1178_s29, %s1179_s30  }
  0x2d   :  { %s1182_s21 = smov [#allocation8]   ;;  %s1183_s23 = smov [#allocation11]  }
  0x2e   :  { %s46_s22 = sshll.u32 %s1182_s21, 4  ;;  %s70_s24 = sshll.u32 %s1183_s23, 4  ;;  %s47_s22 = int_to_ptr.vmem [resolvable:$true] %s46_s22  ;;  %s71_s24 = int_to_ptr.vmem [resolvable:$true] %s70_s24 }
  0x2f   :  { %s1094_s5 = scalar_lea.vmem %s47_s22, 512  ;;  %p1099_p7 = scmp.lt.s32.totalorder %s47_s22, %s47_s22 }
  0x30   :  { %p1095_p6 = scmp.ne.s32.totalorder %s47_s22, %s1094_s5  ;;  %p1100_p8 = scmp.lt.s32.totalorder %s1094_s5, %s1094_s5 }
  0x32   :  { %p1101_p9 = por %p1100_p8, %p1099_p7 }
  0x34   :  { %p1102_p10 = pnand %p1101_p9, %p1095_p6 }
  0x36   :  { %1105 = shalt.err (!%p1102_p10)
}
  0x37   :  { %52 = dma.hbm_to_vmem [thread:$0]  %s1399_s2, 512, %s47_s22, [#allocation7], %s1178_s29, %s1178_s29, %s1179_s30  }
  0x38   :  { %s1114_s0 = scalar_lea.vmem %s71_s24, 512  ;;  %p1119_p12 = scmp.lt.s32.totalorder %s71_s24, %s71_s24 }
  0x39   :  { %p1115_p11 = scmp.ne.s32.totalorder %s71_s24, %s1114_s0  ;;  %p1120_p13 = scmp.lt.s32.totalorder %s1114_s0, %s1114_s0 }
  0x3b   :  { %p1121_p0 = por %p1120_p13, %p1119_p12 }
  0x3d   :  { %p1122_p1 = pnand %p1121_p0, %p1115_p11 }
  0x3f   :  { %1125 = shalt.err (!%p1122_p1)
}
  0x40   :  { %76 = dma.hbm_to_vmem [thread:$0]  %s1401_s4, 512, %s71_s24, [#allocation10], %s1178_s29, %s1178_s29, %s1179_s30  }
  0x41   :  { %s1184_s8 = smov [#allocation14]  }
  0x42   :  { %s94_s9 = sshll.u32 %s1184_s8, 4  ;;  %s95_s9 = int_to_ptr.vmem [resolvable:$true] %s94_s9 }
  0x43   :  { %s1134_s10 = scalar_lea.vmem %s95_s9, 512  ;;  %p1139_p3 = scmp.lt.s32.totalorder %s95_s9, %s95_s9 }
  0x44   :  { %p1135_p2 = scmp.ne.s32.totalorder %s95_s9, %s1134_s10  ;;  %p1140_p4 = scmp.lt.s32.totalorder %s1134_s10, %s1134_s10 }
  0x46   :  { %p1141_p5 = por %p1140_p4, %p1139_p3 }
  0x48   :  { %p1142_p6 = pnand %p1141_p5, %p1135_p2 }
  0x4a   :  { %1145 = shalt.err (!%p1142_p6)
}
  0x4b   :  { %100 = dma.hbm_to_vmem [thread:$0]  %s1403_s6, 512, %s95_s9, [#allocation13], %s1178_s29, %s1178_s29, %s1179_s30  }
  0x4c   :  { %1166 = dma.done.wait [#allocation4], 512  }
  0x4d   :  { %1167 = vsyncadd [#allocation4], 4294966784 }
  0x4e   :  { %1168 = dma.done.wait [#allocation7], 1024  }
  0x4f   :  { %1169 = vsyncadd [#allocation7], 4294966272 }
  0x50   :  { %1170 = dma.done.wait [#allocation10], 768  }
  0x51   :  { %1171 = vsyncadd [#allocation10], 4294966528 }
  0x52   :  { %1172 = dma.done.wait [#allocation13], 1024  }
  0x53   :  { %1173 = vsyncadd [#allocation13], 4294966272  ;;  %vm122_vm0 = vcmask 261120   ;;  %v1185_v0 = vmov 0.0   ;;  %vm1186_vm1 = vmmov 0   ;;  %v128_v1 = vld [vmem:[#allocation6 + $0x8] sm:$0xff] }
  0x54   :  { %874 = vmatprep.subr.mxu0 %v1185_v0  ;;  %126 = vst.msk [vmem:[#allocation2 + $0x18] sm:$0xff] %vm122_vm0, %v1185_v0  ;;  %123 = vst.msk [vmem:[#allocation2] sm:$0xff] %vm122_vm0, %v1185_v0  ;;  %882 = vmatprep.mubr.msk.f32.mxu0 %vm1186_vm1, %v1185_v0  ;;  %v127_v2 = vld [vmem:[#allocation6] sm:$0xff]  ;;  %v821_v5 = vmul.f32 -1.442695, %v128_v1  ;;  %v1287_v7 = vld [vmem:[#allocation11 + $0x18] sm:$0xff] }
  0x55   :  { %124 = vst.msk [vmem:[#allocation2 + $0x8] sm:$0xff] %vm122_vm0, %v1185_v0  ;;  %125 = vst.msk [vmem:[#allocation2 + $0x10] sm:$0xff] %vm122_vm0, %v1185_v0  ;;  %885 = vmatprep.subr.mxu1 %v1185_v0  ;;  %893 = vmatprep.mubr.msk.f32.mxu1 %vm1186_vm1, %v1185_v0  ;;  %v820_v6 = vmul.f32 -1.442695, %v127_v2  ;;  %v1291_v8 = vld [vmem:[#allocation11 + $0x10] sm:$0xff]  ;;  %v1294_v9 = vld [vmem:[#allocation11 + $0x8] sm:$0xff] }
  0x56   :  { %974 = vpow2.f32 %v821_v5  ;;  %886 = vmatpush3.msra.mxu1 %v1287_v7  ;;  %v142_v10 = vld [vmem:[#allocation8 + $0x8] sm:$0xff]  ;;  %v141_v11 = vld [vmem:[#allocation8] sm:$0xff]  ;;  %v1320_v27 = vld [vmem:[#allocation12 + $0x8] sm:$0xff]  ;;  %s1187_s4 = smov [#allocation15]   ;;  %vm800_vm2 = vcmask 254976  }
  0x57   :  { %976 = vpow2.f32 %v820_v6  ;;  %887 = vmatprep.subr.mxu1 %v1185_v0  ;;  %v161_v24 = vld [vmem:[#allocation9] sm:$0xff]  ;;  %v1309_v25 = vld [vmem:[#allocation12 + $0x18] sm:$0xff]  ;;  %v149_v28 = vld [vmem:[#allocation11] sm:$0xff]  ;;  %s808_s6 = sshll.u32 %s1187_s4, 4  ;;  %s809_s6 = int_to_ptr.vmem [resolvable:$true] %s808_s6 }
  0x58   :  { %888 = vmatpush3.msra.mxu1 %v1291_v8  ;;  %978 = vtanh.f32 %v142_v10  ;;  %v1314_v26 = vld [vmem:[#allocation12 + $0x10] sm:$0xff]  ;;  %v1326_v29 = vld [vmem:[#allocation12] sm:$0xff]  ;;  %v1339_v32 = vld [vmem:[#allocation14 + $0x18] sm:$0xff]  ;;  %s1146_s29 = scalar_lea.vmem %s809_s6, 32  ;;  %p1151_p8 = scmp.lt.s32.totalorder %s809_s6, %s809_s6 }
  0x59   :  { %889 = vmatprep.subr.mxu1 %v1185_v0  ;;  %980 = vtanh.f32 %v141_v11  ;;  %v1343_v33 = vld [vmem:[#allocation14 + $0x10] sm:$0xff]  ;;  %v1347_v34 = vld [vmem:[#allocation14 + $0x8] sm:$0xff]  ;;  %v1351_v35 = vld [vmem:[#allocation14] sm:$0xff]  ;;  %p1147_p7 = scmp.ne.s32.totalorder %s809_s6, %s1146_s29  ;;  %p1152_p9 = scmp.lt.s32.totalorder %s1146_s29, %s1146_s29 }
  0x5a   :  { %890 = vmatpush3.msra.mxu1 %v1294_v9  ;;  %v239_v36 = vld [vmem:[#allocation3 + $0x10] sm:$0xff]  ;;  %v480_v63 = vld [vmem:[#allocation9 + $0x8] sm:$0xff] }
  0x5b   :  { %v1284_v3 = vld [vmem:[#allocation2 + $0x18] sm:$0xff]  ;;  %891 = vmatprep.subr.mxu1 %v1185_v0  ;;  %v320_v47 = vld [vmem:[#allocation6 + $0x10] sm:$0xff]  ;;  %p1153_p10 = por %p1152_p9, %p1151_p8 }
  0x5c   :  { %v164_v4 = vld [vmem:[#allocation2 + $0x10] sm:$0xff]  ;;  %875 = vmatpush3.msra.mxu0 %v1284_v3  ;;  %892 = vmatpush3.msra.mxu1 %v149_v28 }
  0x5d   :  { %876 = vmatprep.subr.mxu0 %v1185_v0  ;;  %907 = vmatprep.subr.mxu1 %v1185_v0  ;;  %v398_v52 = vld [vmem:[#allocation8 + $0x10] sm:$0xff]  ;;  %p1154_p11 = pnand %p1153_p10, %p1147_p7 }
  0x5e   :  { %877 = vmatpush3.msra.mxu0 %v164_v4 }
  0x5f   :  { %878 = vmatprep.subr.mxu0 %v1185_v0 }
  0x63   :  { %v975_v12 = vpop.eup %974 }
  0x64   :  { %v977_v13 = vpop.eup %976  ;;  %v136_v14 = vadd.f32 1.0, %v975_v12 }
  0x65   :  { %v135_v15 = vadd.f32 1.0, %v977_v13  ;;  %v979_v16 = vpop.eup %978 }
  0x66   :  { %982 = vrcp.f32 %v136_v14  ;;  %v981_v17 = vpop.eup %980  ;;  %v639_v14 = vld [vmem:[#allocation6 + $0x18] sm:$0xff] }
  0x67   :  { %984 = vrcp.f32 %v135_v15 }
  0x73   :  { %v983_v18 = vpop.eup %982 }
  0x74   :  { %v985_v19 = vpop.eup %984  ;;  %v146_v20 = vmul.f32 %v983_v18, %v979_v16  ;;  %v717_v18 = vld [vmem:[#allocation8 + $0x18] sm:$0xff] }
  0x75   :  { %v145_v21 = vmul.f32 %v985_v19, %v981_v17 }
  0x76   :  { %148 = vst.msk [vmem:[#allocation2 + $0x8] sm:$0xff] %vm122_vm0, %v146_v20 }
  0x77   :  { %147 = vst.msk [vmem:[#allocation2] sm:$0xff] %vm122_vm0, %v145_v21 }
  0x7d   :  { %v1303_v22 = vld [vmem:[#allocation2 + $0x8] sm:$0xff] }
  0x7e   :  { %879 = vmatpush3.msra.mxu0 %v1303_v22  ;;  %v1306_v23 = vld [vmem:[#allocation2] sm:$0xff] }
  0x7f   :  { %880 = vmatprep.subr.mxu0 %v1185_v0 }
  0x80   :  { %881 = vmatpush3.msra.mxu0 %v1306_v23 }
  0x81   :  { %883 = vmatmul.mubr.msk.f32.vlgmr.msra.gmra.mxu0 %vm122_vm0, %v161_v24  ;;  %896 = vmatprep.subr.mxu0 %v1185_v0 }
  0x82   :  { %897 = vmatpush3.msra.mxu0 %v1309_v25  ;;  %904 = vmatprep.mubr.msk.f32.mxu0 %vm1186_vm1, %v1185_v0 }
  0x83   :  { %898 = vmatprep.subr.mxu0 %v1185_v0 }
  0x84   :  { %899 = vmatpush3.msra.mxu0 %v1314_v26 }
  0x85   :  { %900 = vmatprep.subr.mxu0 %v1185_v0 }
  0x86   :  { %901 = vmatpush3.msra.mxu0 %v1320_v27 }
  0x87   :  { %902 = vmatprep.subr.mxu0 %v1185_v0 }
  0x88   :  { %903 = vmatpush3.msra.mxu0 %v1326_v29 }
  0x89   :  { %918 = vmatprep.subr.mxu0 %v1185_v0 }
 0x141   :  { %v235_v30 = vpop.f32.mrf.mxu0 }
 0x142   :  { %894 = vmatmul.mubr.msk.f32.vlgmr.msra.gmra.mxu1 %vm122_vm0, %v235_v30  ;;  %905 = vmatmul.mubr.msk.f32.vlgmr.msra.gmra.mxu0 %vm122_vm0, %v235_v30 }
 0x143   :  { %v884_v31 = vpop.f32.mrf.mxu0  ;;  %915 = vmatprep.mubr.msk.f32.mxu1 %vm1186_vm1, %v1185_v0  ;;  %919 = vmatpush3.msra.mxu0 %v1284_v3  ;;  %v558_v3 = vld [vmem:[#allocation3 + $0x18] sm:$0xff] }
 0x144   :  { %920 = vmatprep.subr.mxu0 %v1185_v0  ;;  %926 = vmatprep.mubr.msk.f32.mxu0 %vm1186_vm1, %v1185_v0 }
 0x145   :  { %908 = vmatpush3.msra.mxu1 %v1339_v32 }
 0x146   :  { %909 = vmatprep.subr.mxu1 %v1185_v0 }
 0x147   :  { %910 = vmatpush3.msra.mxu1 %v1343_v33 }
 0x148   :  { %911 = vmatprep.subr.mxu1 %v1185_v0 }
 0x149   :  { %912 = vmatpush3.msra.mxu1 %v1347_v34 }
 0x14a   :  { %913 = vmatprep.subr.mxu1 %v1185_v0 }
 0x14b   :  { %914 = vmatpush3.msra.mxu1 %v1351_v35 }
 0x14c   :  { %929 = vmatprep.subr.mxu1 %v1185_v0 }
 0x202   :  { %v309_v37 = vpop.f32.mrf.mxu1  ;;  %v387_v38 = vpop.f32.mrf.mxu0 }
 0x203   :  { %v313_v39 = vadd.f32 %v309_v37, %v239_v36  ;;  %v391_v48 = vadd.f32 %v387_v38, %v320_v47 }
 0x204   :  { %v895_v40 = vpop.f32.mrf.mxu1  ;;  %v906_v41 = vpop.f32.mrf.mxu0 }
 0x205   :  { %v824_v42 = vmul.f32 -1.442695, %v313_v39  ;;  %v826_v49 = vmul.f32 -1.442695, %v391_v48 }
 0x207   :  { %986 = vpow2.f32 %v824_v42 }
 0x214   :  { %v987_v43 = vpop.eup %986 }
 0x215   :  { %v317_v44 = vadd.f32 1.0, %v987_v43 }
 0x217   :  { %988 = vrcp.f32 %v317_v44 }
 0x218   :  { %990 = vpow2.f32 %v826_v49 }
 0x224   :  { %v989_v45 = vpop.eup %988 }
 0x225   :  { %v399_v46 = vmul.f32 %v989_v45, %v235_v30  ;;  %v991_v50 = vpop.eup %990 }
 0x226   :  { %v395_v51 = vadd.f32 1.0, %v991_v50 }
 0x227   :  { %916 = vmatmul.mubr.msk.f32.vlgmr.msra.gmra.mxu1 %vm122_vm0, %v399_v46 }
 0x228   :  { %930 = vmatpush3.msra.mxu1 %v1287_v7  ;;  %937 = vmatprep.mubr.msk.f32.mxu1 %vm1186_vm1, %v1185_v0  ;;  %992 = vrcp.f32 %v395_v51 }
 0x229   :  { %931 = vmatprep.subr.mxu1 %v1185_v0 }
 0x22a   :  { %932 = vmatpush3.msra.mxu1 %v1291_v8 }
 0x22b   :  { %933 = vmatprep.subr.mxu1 %v1185_v0 }
 0x22c   :  { %934 = vmatpush3.msra.mxu1 %v1294_v9 }
 0x22d   :  { %935 = vmatprep.subr.mxu1 %v1185_v0 }
 0x22e   :  { %936 = vmatpush3.msra.mxu1 %v149_v28 }
 0x22f   :  { %951 = vmatprep.subr.mxu1 %v1185_v0 }
 0x235   :  { %v993_v56 = vpop.eup %992 }
 0x236   :  { %v475_v57 = vsub.f32 1.0, %v993_v56 }
 0x238   :  { %v476_v59 = vmul.f32 %v475_v57, %v235_v30 }
 0x2e7   :  { %v469_v53 = vpop.f32.mrf.mxu1 }
 0x2e8   :  { %v473_v54 = vadd.f32 %v469_v53, %v398_v52 }
 0x2e9   :  { %v917_v55 = vpop.f32.mrf.mxu1 }
 0x2ea   :  { %994 = vtanh.f32 %v473_v54 }
 0x2f7   :  { %v995_v58 = vpop.eup %994 }
 0x2f8   :  { %v477_v60 = vmul.f32 %v995_v58, %v993_v56 }
 0x2fa   :  { %v478_v61 = vadd.f32 %v477_v60, %v476_v59 }
 0x2fc   :  { %479 = vst.msk [vmem:[#allocation2 + $0x10] sm:$0xff] %vm122_vm0, %v478_v61 }
 0x303   :  { %v483_v62 = vld [vmem:[#allocation2 + $0x10] sm:$0xff] }
 0x304   :  { %921 = vmatpush3.msra.mxu0 %v483_v62 }
 0x305   :  { %922 = vmatprep.subr.mxu0 %v1185_v0 }
 0x306   :  { %923 = vmatpush3.msra.mxu0 %v1303_v22 }
 0x307   :  { %924 = vmatprep.subr.mxu0 %v1185_v0 }
 0x308   :  { %925 = vmatpush3.msra.mxu0 %v1306_v23 }
 0x309   :  { %927 = vmatmul.mubr.msk.f32.vlgmr.msra.gmra.mxu0 %vm122_vm0, %v480_v63  ;;  %940 = vmatprep.subr.mxu0 %v1185_v0 }
 0x30a   :  { %941 = vmatpush3.msra.mxu0 %v1309_v25  ;;  %948 = vmatprep.mubr.msk.f32.mxu0 %vm1186_vm1, %v1185_v0 }
 0x30b   :  { %942 = vmatprep.subr.mxu0 %v1185_v0 }
 0x30c   :  { %943 = vmatpush3.msra.mxu0 %v1314_v26 }
 0x30d   :  { %944 = vmatprep.subr.mxu0 %v1185_v0 }
 0x30e   :  { %945 = vmatpush3.msra.mxu0 %v1320_v27 }
 0x30f   :  { %946 = vmatprep.subr.mxu0 %v1185_v0 }
 0x310   :  { %947 = vmatpush3.msra.mxu0 %v1326_v29 }
 0x3c9   :  { %v554_v1 = vpop.f32.mrf.mxu0 }
 0x3ca   :  { %938 = vmatmul.mubr.msk.f32.vlgmr.msra.gmra.mxu1 %vm122_vm0, %v554_v1  ;;  %949 = vmatmul.mubr.msk.f32.vlgmr.msra.gmra.mxu0 %vm122_vm0, %v554_v1 }
 0x3cb   :  { %v928_v2 = vpop.f32.mrf.mxu0  ;;  %952 = vmatpush3.msra.mxu1 %v1339_v32  ;;  %959 = vmatprep.mubr.msk.f32.mxu1 %vm1186_vm1, %v1185_v0 }
 0x3cc   :  { %953 = vmatprep.subr.mxu1 %v1185_v0 }
 0x3cd   :  { %954 = vmatpush3.msra.mxu1 %v1343_v33 }
 0x3ce   :  { %955 = vmatprep.subr.mxu1 %v1185_v0 }
 0x3cf   :  { %956 = vmatpush3.msra.mxu1 %v1347_v34 }
 0x3d0   :  { %957 = vmatprep.subr.mxu1 %v1185_v0 }
 0x3d1   :  { %958 = vmatpush3.msra.mxu1 %v1351_v35 }
 0x48a   :  { %v628_v4 = vpop.f32.mrf.mxu1  ;;  %v706_v5 = vpop.f32.mrf.mxu0 }
 0x48b   :  { %v632_v6 = vadd.f32 %v628_v4, %v558_v3  ;;  %v710_v15 = vadd.f32 %v706_v5, %v639_v14 }
 0x48c   :  { %v939_v7 = vpop.f32.mrf.mxu1  ;;  %v950_v8 = vpop.f32.mrf.mxu0 }
 0x48d   :  { %v830_v9 = vmul.f32 -1.442695, %v632_v6  ;;  %v832_v0 = vmul.f32 -1.442695, %v710_v15 }
 0x48f   :  { %996 = vpow2.f32 %v830_v9 }
 0x49c   :  { %v997_v10 = vpop.eup %996 }
 0x49d   :  { %v636_v11 = vadd.f32 1.0, %v997_v10 }
 0x49f   :  { %998 = vrcp.f32 %v636_v11 }
 0x4a0   :  { %1000 = vpow2.f32 %v832_v0 }
 0x4ac   :  { %v999_v12 = vpop.eup %998 }
 0x4ad   :  { %v718_v13 = vmul.f32 %v999_v12, %v554_v1  ;;  %v1001_v16 = vpop.eup %1000 }
 0x4ae   :  { %v714_v17 = vadd.f32 1.0, %v1001_v16 }
 0x4af   :  { %960 = vmatmul.mubr.msk.f32.vlgmr.msra.gmra.mxu1 %vm122_vm0, %v718_v13 }
 0x4b0   :  { %1002 = vrcp.f32 %v714_v17 }
 0x4bd   :  { %v1003_v22 = vpop.eup %1002 }
 0x4be   :  { %v794_v23 = vsub.f32 1.0, %v1003_v22 }
 0x4c0   :  { %v795_v25 = vmul.f32 %v794_v23, %v554_v1 }
 0x56f   :  { %v788_v19 = vpop.f32.mrf.mxu1 }
 0x570   :  { %v792_v20 = vadd.f32 %v788_v19, %v717_v18 }
 0x571   :  { %v961_v21 = vpop.f32.mrf.mxu1 }
 0x572   :  { %1004 = vtanh.f32 %v792_v20 }
 0x57f   :  { %v1005_v24 = vpop.eup %1004 }
 0x580   :  { %v796_v26 = vmul.f32 %v1005_v24, %v1003_v22 }
 0x582   :  { %v797_v27 = vadd.f32 %v796_v26, %v795_v25 }
 0x584   :  { %798 = vst.msk [vmem:[#allocation2 + $0x18] sm:$0xff] %vm122_vm0, %v797_v27 }
 0x58b   :  { %v799_v28 = vld [vmem:[#allocation2 + $0x18] sm:$0x3] }
 0x58c   :  { %801 = vst.msk [vmem:[#allocation15] sm:$0x3] %vm800_vm2, %v799_v28 }
 0x58d   :  { %1157 = shalt.err (!%p1154_p11)
}
 0x58e   :  { %811 = dma.vmem_to_hbm [thread:$0]  %s809_s6, 32, %s1404_s7, [#allocation5]  }
 0x58f   :  { %1174 = dma.done.wait [#allocation5], 32  }
 0x590   :  { %1175 = vsyncadd [#allocation5], 4294967264 }
 0x591   :  { %815 = vsyncpa [#allocation4], 1 }
 0x592   :  { %816 = vsyncpa [#allocation7], 1 }
 0x593   :  { %817 = vsyncpa [#allocation10], 1 }
 0x594   :  { %818 = vsyncpa [#allocation13], 1 }
 0x595   :  { %819 = vsyncpa [#allocation5], 1 }

</bundles_post_ra>
